<compile_context>
chip_gen: v5e
topology: v5e:2x2
jax: 0.10.0
libtpu: 0.0.40
codegen_flags: <defaults>
</compile_context>

<pallas_src>
import numpy as np
import jax
import jax.numpy as jnp
from jax.experimental import pallas as pl
from jax.experimental.pallas import tpu as pltpu


INPUT_LEN = 11     # K of the matmul (PCA dim)
OUTPUT_DIM = 128   # N of the matmul (units)

# Below this many rows the pallas_call setup overhead dominates; plain XLA
# (which can also fuse this tiny GEMM into neighbours) is strictly faster.
MIN_PALLAS_ROWS = 2048


def make_pca_transform(input_len=INPUT_LEN, output_dim=OUTPUT_DIM):
    """Deterministic reimplementation of the PyTorch __init__:
         T = PCA(input_len).fit_transform(np.eye(output_dim))   # (128, 11)
         T = T.t().float()                                      # (11, 128)
         T = (T - T.mean()) / T.std()                           # global standardize
    """
    X = np.eye(output_dim, dtype=np.float64)
    Xc = X - X.mean(axis=0, keepdims=True)
    U, S, _ = np.linalg.svd(Xc, full_matrices=False)
    # sklearn's svd_flip sign convention (deterministic for a given LAPACK)
    max_abs_rows = np.argmax(np.abs(U), axis=0)
    signs = np.sign(U[max_abs_rows, range(U.shape[1])])
    U = U * signs
    T = U[:, :input_len] * S[:input_len]            # fit_transform -> (128, 11)
    T = T.T.astype(np.float32)                      # (11, 128)
    T = (T - T.mean()) / T.std(ddof=1)              # torch .std() is unbiased
    return jnp.asarray(T, dtype=jnp.float32)


def _pca_matmul_kernel(x_ref, w_ref, o_ref):
    # One (tile, 11) x (11, 128) -> (tile, 128) block on the MXU, f32 accumulate.
    # Memory-bound: keep N=128 as a single lane-dense block, no K/N tiling.
    o_ref[...] = jnp.dot(
        x_ref[...], w_ref[...], preferred_element_type=jnp.float32
    ).astype(o_ref.dtype)


def _round_up(a, b):
    return ((a + b - 1) // b) * b


def _tile_and_vmem_for_chip():
    """Per-generation (TILE_M, vmem_limit_bytes).

    Double-buffered footprint per tile (the (tile, 11) f32 x block lane-pads to
    (tile, 128) in VMEM, so inputs cost as much as outputs):
        tile= 8192 -> ~17 MiB     tile=16384 -> ~34 MiB
    """
    try:
        vmem_bytes = int(pltpu.get_tpu_info().vmem_capacity_bytes)
    except Exception:
        vmem_bytes = 64 << 20  # conservative: assume v7x-sized per-TC VMEM
    if vmem_bytes >= (128 << 20):
        # v5e / v6e: 128 MiB physical VMEM -> big tiles, raise scoped limit.
        return 16384, 48 << 20
    # v7x: 64 MiB per TensorCore -> keep <= half for double buffering.
    return 8192, 32 << 20


def pca_encode(x, transform, *, tile_m=None, out_dtype=None, force_pallas=False):
    """Forward pass: x @ transform, for x of shape (..., INPUT_LEN)."""
    *lead, k = x.shape
    assert k == transform.shape[0], (x.shape, transform.shape)
    n = transform.shape[1]
    m = int(np.prod(lead)) if lead else 1
    out_dtype = x.dtype if out_dtype is None else out_dtype
    x2d = x.reshape(m, k)

    # Tiny problems: a custom call costs more than the matmul; let XLA fuse it.
    if m < MIN_PALLAS_ROWS and not force_pallas:
        out2d = jnp.dot(x2d, transform, preferred_element_type=jnp.float32)
        return out2d.astype(out_dtype).reshape(*lead, n)

    default_tile, vmem_limit = _tile_and_vmem_for_chip()
    if tile_m is None:
        tile_m = default_tile

    # Tile over the flattened leading dims: multiple of 8 sublanes, capped so
    # moderate M still produces >= ~8 grid steps (keeps both v7x TCs busy).
    tile = max(8, min(tile_m, _round_up(pl.cdiv(m, 8), 8)))
    tile = _round_up(tile, 8)
    grid = (pl.cdiv(m, tile),)   # trailing partial block handled by Pallas masking

    out2d = pl.pallas_call(
        _pca_matmul_kernel,
        out_shape=jax.ShapeDtypeStruct((m, n), out_dtype),
        grid=grid,
        in_specs=[
            # x: one (tile, 11) row-block per grid step.
            pl.BlockSpec((tile, k), lambda i: (i, 0)),
            # weight: constant index_map -> fetched once, resident across grid.
            pl.BlockSpec((k, n), lambda i: (0, 0)),
        ],
        out_specs=pl.BlockSpec((tile, n), lambda i: (i, 0)),
        compiler_params=pltpu.CompilerParams(
            # Rows are independent -> shard the M loop across TensorCores.
            dimension_semantics=("parallel",),
            vmem_limit_bytes=vmem_limit,
        ),
        cost_estimate=pl.CostEstimate(
            flops=2 * m * k * n,
            bytes_accessed=(m * k + m * n + k * n) * 4,
            transcendentals=0,
        ),
    )(x2d, transform)

    return out2d.reshape(*lead, n)


if __name__ == "__main__":
    transform = make_pca_transform()

    # Small shape consistent with the module: last dim must be INPUT_LEN (=11).
    key = jax.random.PRNGKey(0)
    batch, seq = 2, 8
    x_small = jax.random.normal(key, (batch, seq, INPUT_LEN), dtype=jnp.float32)

    # Force the Pallas path even at tiny M so the kernel itself is exercised.
    out_small = jax.block_until_ready(
        pca_encode(x_small, transform, force_pallas=True)
    )
    ref_small = x_small @ transform
    assert out_small.shape == (batch, seq, OUTPUT_DIM), out_small.shape
    np.testing.assert_allclose(
        np.asarray(out_small), np.asarray(ref_small), rtol=1e-5, atol=1e-5
    )

    # Exercise the no-pad boundary-masked path: M=1000 is neither a multiple of
    # 8 nor of the tile, so the final grid step issues masked stores.
    x_big = jax.random.normal(
        jax.random.PRNGKey(1), (1000, INPUT_LEN), dtype=jnp.float32
    )
    out_big = jax.block_until_ready(
        pca_encode(x_big, transform, tile_m=256, force_pallas=True)
    )
    np.testing.assert_allclose(
        np.asarray(out_big), np.asarray(x_big @ transform), rtol=1e-5, atol=1e-5
    )

    print("KERNEL_OK")
</pallas_src>

<mosaic_0001>
module attributes {stable_mosaic.version = 11 : i64} {
  func.func @_pca_matmul_kernel(%arg0: i32, %arg1: memref<8x11xf32, #tpu.memory_space<vmem>>, %arg2: memref<11x128xf32, #tpu.memory_space<vmem>>, %arg3: memref<8x128xf32, #tpu.memory_space<vmem>>) attributes {dimension_semantics = [#tpu.dimension_semantics<parallel>], iteration_bounds = array<i64: 2>, scalar_prefetch = 0 : i64, scratch_operands = 0 : i64, tpu.core_type = #tpu.core_type<tc>, window_params = [{transform_indices = @transform_0, window_bounds = array<i64: 8, 11>}, {pipeline_mode = #tpu.pipeline_mode<synchronous>, transform_indices = @transform_1, window_bounds = array<i64: 11, 128>}, {transform_indices = @transform_2, window_bounds = array<i64: 8, 128>}]} {
    %c0 = arith.constant 0 : index
    %c0_0 = arith.constant 0 : index
    %0 = vector.load %arg1[%c0, %c0_0] : memref<8x11xf32, #tpu.memory_space<vmem>>, vector<8x11xf32>
    %c0_1 = arith.constant 0 : index
    %c0_2 = arith.constant 0 : index
    %1 = vector.load %arg2[%c0_1, %c0_2] : memref<11x128xf32, #tpu.memory_space<vmem>>, vector<11x128xf32>
    %cst = arith.constant dense<0.000000e+00> : vector<8x128xf32>
    %2 = tpu.matmul %0, %1, %cst {dimension_numbers = #tpu.dot_dimension_numbers<[1], [0], [0], [1], [0, 0, 1, 1], [], []>} : vector<8x11xf32>, vector<11x128xf32>, vector<8x128xf32> -> vector<8x128xf32>
    %c0_3 = arith.constant 0 : index
    %c0_4 = arith.constant 0 : index
    %3 = vector.load %arg3[%c0_3, %c0_4] : memref<8x128xf32, #tpu.memory_space<vmem>>, vector<8x128xf32>
    tpu.vector_store %arg3[%c0_3, %c0_4], %2 {strides = array<i32>} : memref<8x128xf32, #tpu.memory_space<vmem>>, vector<8x128xf32>,
    return
  }
  func.func @transform_0(%arg0: i32) -> (i32, i32) {
    %c0_i32 = arith.constant 0 : i32
    %c0_i32_0 = arith.constant 0 : i32
    return %arg0, %c0_i32 : i32, i32
  }
  func.func @transform_1(%arg0: i32) -> (i32, i32) {
    %c0_i32 = arith.constant 0 : i32
    %c0_i32_0 = arith.constant 0 : i32
    %c0_i32_1 = arith.constant 0 : i32
    return %c0_i32, %c0_i32_0 : i32, i32
  }
  func.func @transform_2(%arg0: i32) -> (i32, i32) {
    %c0_i32 = arith.constant 0 : i32
    %c0_i32_0 = arith.constant 0 : i32
    return %arg0, %c0_i32 : i32, i32
  }
}

</mosaic_0001>

<bundles_post_ra>
// kernel: tpu_custom_call.1
= control target key start
LH: loop header
LB: loop body
LE: loop exit
PB: predicated region body
PF: predicated region fallthrough
CT: control target
= control target key end

     0   :  { %7 = vsyncpa [#allocation3], 0  ;;  %s667_s0 = inlined_call_operand.hbm [shape: f32[16,11], index: 0, kind: input, shape index: {}]   ;;  %s668_s1 = inlined_call_operand.hbm [shape: f32[11,128], index: 1, kind: input, shape index: {}]   ;;  %s669_s2 = inlined_call_operand.hbm [shape: f32[16,128], index: 2, kind: output, shape index: {}]  }
   0x1   :  { %9 = vsyncpa [#allocation3 + $0x1], 0 }
   0x2   :  { %10 = vsyncpa [#allocation6], 0 }
   0x3   :  { %11 = vsyncpa [#allocation4], 0 }
   0x4   :  { %13 = vsyncpa [#allocation4 + $0x1], 0  ;;  %s531_s9 = smov 0   ;;  %s533_s10 = smov 0  }
   0x5   :  { %s535_s11 = smov 0   ;;  %s537_s12 = smov 0  }
   0x6 LB: > { %s108_s15 = sshll.u32 %s668_s1, 4  ;;  %s555_s16 = sadd.s32 4294967295, %s511_s12   ;;  %s511_s12 = sphi %s537_s12, %s679_s12   ;;  %s507_s11 = sphi %s535_s11, %s678_s11   ;;  %s503_s10 = sphi %s533_s10, %s677_s10   ;;  %s499_s9 = sphi %s531_s9, %s676_s9   ;;  %s109_s15 = int_to_ptr.hbm [resolvable:$true] %s108_s15 }
   0x7   : > { %p307_p0 = scmp.ge.s32.totalorder %s511_s12, 1  ;;  %p40_p1 = scmp.eq.s32.totalorder %s555_s16, 0 }
   0x8   : > { %p97_p2 = scmp.lt.s32.totalorder %s511_s12, 3  ;;  %s513_s18 = smov [#allocation5]  }
   0x9   : > { %s110_s19 = sshll.u32 %s513_s18, 4  ;;  %s514_s20 = smov 128   ;;  %s111_s19 = int_to_ptr.vmem [resolvable:$true] %s110_s19 }
   0xa   : > { %p560_p3 = pnand %p307_p0, %p97_p2  ;;  %s515_s21 = smov 8  }
   0xb   : > { %s306_s22 = sadd.s32 4294967294, %s511_s12   ;;  %s571_s23 = sadd.s32 1, %s511_s12  }
   0xc   : > { %p330_p4 = pneg %p560_p3  ;;  %s26_s24 = sadd.s32 1, %s507_s11 }
   0xd   : > { %s23_s25 = ssub.s32 %s511_s12, %s571_s23  ;;  %p33_p7 = scmp.ne.s32.totalorder %s507_s11, %s503_s10 }
   0xe   : > { %p331_p6 = pnand %p330_p4, %p40_p1  ;;  %p24_p8 = scmp.eq.s32.totalorder %s23_s25, 0 }
   0xf   : > { %p34_p9 = scmp.eq.s32.totalorder %s511_s12, 0  ;;  %p39_p10 = scmp.ne.s32.totalorder %s503_s10, %s499_s9 }
  0x10   : > { %333 = dma.hbm_to_vmem [thread:$0]  (!%p331_p6), %s109_s15, 256, %s111_s19, [#allocation6], %s514_s20, %s514_s20, %s515_s21  }
  0x11   : > { %p84_p11 = scmp.eq.s32.totalorder %s555_s16, 1  ;;  %p587_p12 = por %p40_p1, %p39_p10 }
  0x12   : > { %s583_s26 = scalar_select %p24_p8, %s507_s11, %s26_s24  }
  0x13   : > { %p591_p13 = por %p84_p11, %p33_p7  ;;  %p90_p0 = scmp.eq.s32.totalorder %s306_s22, 1 }
  0x14   : > { %p35_p2 = por %p34_p9, %p33_p7  ;;  %s124_s29 = sand.u32 1, %s507_s11  }
  0x15   : > { %p596_p4 = por %p90_p0, %p39_p10  ;;  %p343_p6 = scmp.lt.s32.totalorder %s511_s12, 2 }
  0x16   : > { %s310_s3 = sshll.u32 %s124_s29, 3  ;;  %s311_s4 = sshll.u32 %s511_s12, 3 }
  0x17   : > { %s132_s7 = scalar_lea.hbm %s667_s0, %s311_s4  ;;  %s128_s13 = scalar_lea.vmem [#allocation2], %s310_s3 }
  0x18   : > { %s134_s8 = sshll.u32 %s132_s7, 4  ;;  %s136_s14 = sshll.u32 %s128_s13, 4  ;;  %s135_s8 = int_to_ptr.hbm [resolvable:$true] %s134_s8  ;;  %s137_s14 = int_to_ptr.vmem [resolvable:$true] %s136_s14 }
  0x19   : > { %p605_p8 = pnand %p343_p6, %p35_p2  ;;  %s125_s18 = scalar_lea.sflag [#allocation3], %s124_s29 }
  0x1a   : > { %s411_s19 = sshra.s32 %s135_s8, 4  ;;  %s418_s24 = scalar_lea.hbm %s667_s0, 16  ;;  %s412_s19 = int_to_ptr.hbm [resolvable:$true] %s411_s19 }
  0x1b   : > { %s413_s20 = scalar_lea.hbm %s412_s19, 8  ;;  %p415_p9 = pneg %p605_p8 }
  0x1c   : > { %p414_p7 = scmp.ne.s32.totalorder %s412_s19, %s413_s20  ;;  %p419_p0 = scmp.lt.s32.totalorder %s412_s19, %s667_s0 }
  0x1d   : > { %p420_p2 = scmp.lt.s32.totalorder %s418_s24, %s413_s20 }
  0x1e   : > { %p416_p10 = pnand %p415_p9, %p414_p7 }
  0x1f   : > { %p421_p6 = por %p420_p2, %p419_p0 }
  0x20   : > { %p417_p11 = pneg %p416_p10 }
  0x22   : > { %p422_p5 = pnand %p421_p6, %p417_p11 }
  0x24   : > { %425 = shalt.err (!%p422_p5)
}
  0x25   : > { %337 = dma.hbm_to_vmem [thread:$0]  (!%p605_p8), %s135_s8, 128, %s137_s14, %s125_s18  }
  0x26   : > { %145 = sbr.rel (%p560_p3) target bundleno = 179 (0xb3), region = 28  ;;  %s622_s29 = sand.u32 (!%p560_p3), 1, %s503_s10  }
  0x27   : > { %s313_s4 = sshll.u32 (!%p560_p3), %s622_s29, 3  ;;  %s148_s5 = scalar_lea.sflag (!%p560_p3), [#allocation3], %s622_s29 }
  0x28   : > { %s151_s6 = scalar_lea.vmem (!%p560_p3), [#allocation2], %s313_s4 }
  0x2b   : > { %486 = dma.done.wait (%p587_p12), %s148_s5, 128  }
  0x2c   : > { %488 = vsyncadd (%p587_p12), %s148_s5, 4294967168 }
  0x2d   : > { %490 = dma.done.wait (%p40_p1), [#allocation6], 256  }
  0x2e   : > { %492 = vsyncadd (%p40_p1), [#allocation6], 4294967040  ;;  %vm185_vm0 = vcmask 1042432   ;;  %v180_v0 = vld [vmem:[#allocation5 + $0x8] sm:$0x7]  ;;  %v179_v1 = vld [vmem:[#allocation5] sm:$0xff] }
  0x2f   : > { %316 = vmatpush.msk.msra.mxu0 %vm185_vm0, %v180_v0  ;;  %v178_v2 = vld [vmem:[%s151_s6] sm:$0xff]  ;;  %vm181_vm1 = vcmask 89088   ;;  %s319_s17 = sshll.u32 %s555_s16, 3  ;;  %s177_s13 = scalar_lea.vmem [#allocation7], %s313_s4 }
  0x30   : > { %s221_s8 = scalar_lea.hbm %s669_s2, %s319_s17  ;;  %s223_s14 = sshll.u32 %s177_s13, 4  ;;  %s224_s14 = int_to_ptr.vmem [resolvable:$true] %s223_s14 }
  0x31   : > { %204 = vmatpush.msra.mxu0 %v179_v1  ;;  %s225_s15 = sshll.u32 %s221_s8, 4  ;;  %s211_s18 = scalar_lea.sflag [#allocation4], %s622_s29  ;;  %s226_s15 = int_to_ptr.hbm [resolvable:$true] %s225_s15 }
  0x32   : > { %317 = vmatmul.msk.f32.vlgmr.msra.gmra.mxu0 %vm181_vm1, %v178_v2  ;;  %s455_s19 = sshra.s32 %s226_s15, 4  ;;  %s461_s22 = scalar_lea.hbm %s669_s2, 16  ;;  %s456_s19 = int_to_ptr.hbm [resolvable:$true] %s455_s19 }
  0x33   : > { %s457_s20 = scalar_lea.hbm %s456_s19, 8  ;;  %p462_p12 = scmp.lt.s32.totalorder %s456_s19, %s669_s2 }
  0x34   : > { %p458_p1 = scmp.ne.s32.totalorder %s456_s19, %s457_s20  ;;  %p463_p8 = scmp.lt.s32.totalorder %s461_s22, %s457_s20 }
  0x36   : > { %p459_p3 = pnand %p458_p1, %p591_p13  ;;  %p464_p7 = por %p463_p8, %p462_p12 }
  0x38   : > { %p460_p5 = pneg %p459_p3 }
  0x3a   : > { %p465_p9 = pnand %p464_p7, %p460_p5 }
  0xaf   : > { %v206_v3 = vpop.f32.mrf.mxu0 }
  0xb0   : > { %209 = vst [vmem:[%s177_s13] sm:$0xff] %v206_v3 }
  0xb1   : > { %468 = shalt.err (!%p465_p9)
}
  0xb2   : > { %328 = dma.vmem_to_hbm [thread:$0]  (%p591_p13), %s224_s14, 128, %s226_s15, %s211_s18  }
  0xb3 PF: > { %s237_s3 = sand.u32 1, %s499_s9   ;;  %p675_p10 = scmp.ge.s32.totalorder %s511_s12, 2 }
  0xb4   : > { %s238_s29 = scalar_lea.sflag [#allocation4], %s237_s3 }
  0xb5   : > { %p339_p11 = pnand %p675_p10, %p596_p4 }
  0xb7   : > { %p340_p0 = pneg %p339_p11 }
  0xb9   : > { %494 = dma.done.wait (%p340_p0), %s238_s29, 128  }
  0xba   : > { %496 = vsyncadd (%p340_p0), %s238_s29, 4294967168  ;;  %p16_p2 = scmp.ge.s32.totalorder %s571_s23, 4   ;;  %s676_s9 = smov %s503_s10 }
  0xbb   : > { %s677_s10 = smov %s507_s11  ;;  %s678_s11 = smov %s583_s26 }
  0xbc   : > { %s679_s12 = smov %s571_s23  ;;  %18 = sbr.rel (!%p16_p2) target bundleno = 6 (0x6), region = 77 }
  0xc1   :  { %244 = vsyncpa [#allocation3], 1 }
  0xc2   :  { %246 = vsyncpa [#allocation3 + $0x1], 1 }
  0xc3   :  { %247 = vsyncpa [#allocation6], 1 }
  0xc4   :  { %248 = vsyncpa [#allocation4], 1 }
  0xc5   :  { %250 = vsyncpa [#allocation4 + $0x1], 1 }

</bundles_post_ra>
